<compile_context>
chip_gen: v5e
topology: v5e:2x2
jax: 0.10.0
libtpu: 0.0.40
codegen_flags: <defaults>
</compile_context>

<pallas_src>
import functools

import jax
import jax.numpy as jnp
from jax import lax
from jax.experimental import pallas as pl
from jax.experimental.pallas import tpu as pltpu

LANE = 512            # lane-dense tile width (multiple of 128)
MAX_TILE_ROWS = 1024  # 1024x512 f32 block = 2 MiB/input; 2x3x2 MiB = 12 MiB VMEM


def _round_up(x, m):
    return ((x + m - 1) // m) * m


def _masked_bce_kernel(logits_ref, targets_ref, mask_ref, sum_ref, cnt_ref,
                       *, rows, tile_rows):
    i = pl.program_id(0)

    x = logits_ref[...].astype(jnp.float32)   # native dtype in HBM, f32 in-kernel
    t = targets_ref[...].astype(jnp.float32)
    m = mask_ref[...]                         # native dtype; foreground = (m != 0)

    # Numerically-stable BCE with logits (PyTorch formulation):
    #   max(x, 0) - x*t + log1p(exp(-|x|))
    bce = jnp.maximum(x, 0.0) - x * t + jnp.log1p(jnp.exp(-jnp.abs(x)))

    # Ragged last block: rows past the array edge hold undefined data. Select
    # them away (jnp.where), never multiply — garbage can be NaN/Inf.
    row_idx = lax.broadcasted_iota(jnp.int32, x.shape, 0)
    valid = row_idx < (rows - i * tile_rows)
    sel = jnp.logical_and(valid, m != 0)

    # Per-block lane-dense partials: reduce over sublanes only; the cross-lane /
    # cross-block sums finish in the wrapper (tiny).
    sum_ref[...] = jnp.sum(jnp.where(sel, bce, 0.0), axis=0, keepdims=True)
    cnt_ref[...] = jnp.sum(sel.astype(jnp.float32), axis=0, keepdims=True)


@functools.partial(jax.jit, static_argnames=("lane", "max_tile_rows"))
def masked_bce_loss(logits, targets, mask, *, lane=LANE, max_tile_rows=MAX_TILE_ROWS):
    """Equivalent of MaskedBCELoss.forward for (N, 1, H, W) inputs."""
    total = logits.size
    rows = pl.cdiv(total, lane)

    def _as_rows(a):
        a = a.reshape(-1)                      # free (contiguous) — native dtype kept
        pad = rows * lane - total              # <= lane - 1; 0 in the common case
        if pad:
            a = jnp.pad(a, (0, pad))           # fused into the call via allow_input_fusion
        return a.reshape(rows, lane)

    logits2d = _as_rows(logits)
    targets2d = _as_rows(targets)
    mask2d = _as_rows(mask)                    # no wrapper (mask != 0) pass

    if rows <= 32:
        tile_rows = rows                       # single full-extent block (always legal)
    else:
        # multiple of 32 (f32/bf16/int8 tilings), <= rows, aims for >= ~4 blocks
        tile_rows = min(max_tile_rows, _round_up(pl.cdiv(rows, 4), 32))
    num_blocks = pl.cdiv(rows, tile_rows)      # ragged last block masked in-kernel

    in_spec = pl.BlockSpec((tile_rows, lane), lambda i: (i, 0))
    out_spec = pl.BlockSpec((1, lane), lambda i: (i, 0))

    kernel = functools.partial(_masked_bce_kernel, rows=rows, tile_rows=tile_rows)

    sums, cnts = pl.pallas_call(
        kernel,
        out_shape=(
            jax.ShapeDtypeStruct((num_blocks, lane), jnp.float32),
            jax.ShapeDtypeStruct((num_blocks, lane), jnp.float32),
        ),
        grid=(num_blocks,),
        in_specs=[in_spec, in_spec, in_spec],
        out_specs=(out_spec, out_spec),
        compiler_params=pltpu.CompilerParams(
            dimension_semantics=("parallel",),
            allow_input_fusion=[True, True, True],
        ),
    )(logits2d, targets2d, mask2d)

    total_sum = jnp.sum(sums)
    total_cnt = jnp.sum(cnts)
    # foreground.any() guard: return 0.0 if there are no foreground pixels.
    return jnp.where(total_cnt > 0.0, total_sum / total_cnt, jnp.float32(0.0))


def _reference(logits, targets, mask):
    x = logits.astype(jnp.float32).reshape(-1)
    t = targets.astype(jnp.float32).reshape(-1)
    m = mask.reshape(-1) != 0
    bce = jnp.maximum(x, 0.0) - x * t + jnp.log1p(jnp.exp(-jnp.abs(x)))
    cnt = jnp.sum(m)
    s = jnp.sum(jnp.where(m, bce, 0.0))
    return jnp.where(cnt > 0, s / cnt, 0.0)


if __name__ == "__main__":
    key = jax.random.PRNGKey(0)

    def make(shape, dtype, mask_p, seed_offset):
        k1, k2, k3 = jax.random.split(jax.random.fold_in(key, seed_offset), 3)
        logits = (jax.random.normal(k1, shape, dtype=jnp.float32) * 2.0).astype(dtype)
        targets = jax.random.bernoulli(k2, 0.5, shape).astype(dtype)
        mask = jax.random.bernoulli(k3, mask_p, shape).astype(jnp.float32)
        return logits, targets, mask

    cases = [
        ((2, 1, 16, 16), jnp.float32, 0.6),     # total=512, divisible, rows=1
        ((2, 1, 24, 20), jnp.float32, 0.6),     # total=960, ragged lane tail (pad path)
        ((5, 1, 64, 64), jnp.float32, 0.5),     # rows=40, 2 blocks, partial last block
        ((4, 1, 128, 128), jnp.bfloat16, 0.4),  # rows=128, 4-block parallel grid, bf16
    ]
    for i, (shape, dtype, p) in enumerate(cases):
        logits, targets, mask = make(shape, dtype, p, i)
        out = jax.block_until_ready(masked_bce_loss(logits, targets, mask))
        ref = jax.block_until_ready(_reference(logits, targets, mask))
        assert jnp.allclose(out, ref, rtol=1e-4, atol=1e-5), (shape, out, ref)

    # all-background mask -> guard returns 0.0 (matches `foreground.any()` branch)
    logits, targets, _ = make((2, 1, 16, 16), jnp.float32, 0.6, 99)
    zero_mask = jnp.zeros((2, 1, 16, 16), jnp.float32)
    out = jax.block_until_ready(masked_bce_loss(logits, targets, zero_mask))
    assert out == 0.0, out

    print("KERNEL_OK")
</pallas_src>

<mosaic_0001>
module attributes {stable_mosaic.version = 11 : i64} {
  func.func @_masked_bce_kernel(%arg0: i32, %arg1: memref<1x512xf32, #tpu.memory_space<vmem>>, %arg2: memref<1x512xf32, #tpu.memory_space<vmem>>, %arg3: memref<1x512xf32, #tpu.memory_space<vmem>>, %arg4: memref<1x512xf32, #tpu.memory_space<vmem>>, %arg5: memref<1x512xf32, #tpu.memory_space<vmem>>) attributes {dimension_semantics = [#tpu.dimension_semantics<parallel>], iteration_bounds = array<i64: 1>, scalar_prefetch = 0 : i64, scratch_operands = 0 : i64, tpu.core_type = #tpu.core_type<tc>, window_params = [{transform_indices = @transform_0, window_bounds = array<i64: 1, 512>}, {transform_indices = @transform_1, window_bounds = array<i64: 1, 512>}, {transform_indices = @transform_2, window_bounds = array<i64: 1, 512>}, {transform_indices = @transform_3, window_bounds = array<i64: 1, 512>}, {transform_indices = @transform_4, window_bounds = array<i64: 1, 512>}]} {
    %c0 = arith.constant 0 : index
    %c0_0 = arith.constant 0 : index
    %0 = vector.load %arg1[%c0, %c0_0] : memref<1x512xf32, #tpu.memory_space<vmem>>, vector<1x512xf32>
    %c0_1 = arith.constant 0 : index
    %c0_2 = arith.constant 0 : index
    %1 = vector.load %arg2[%c0_1, %c0_2] : memref<1x512xf32, #tpu.memory_space<vmem>>, vector<1x512xf32>
    %c0_3 = arith.constant 0 : index
    %c0_4 = arith.constant 0 : index
    %2 = vector.load %arg3[%c0_3, %c0_4] : memref<1x512xf32, #tpu.memory_space<vmem>>, vector<1x512xf32>
    %cst = arith.constant 0.000000e+00 : f32
    %3 = vector.broadcast %cst : f32 to vector<1x512xf32>
    %4 = arith.maximumf %0, %3 : vector<1x512xf32>
    %5 = arith.mulf %0, %1 : vector<1x512xf32>
    %6 = arith.subf %4, %5 : vector<1x512xf32>
    %7 = math.absf %0 : vector<1x512xf32>
    %cst_5 = arith.constant 0.000000e+00 : f32
    %8 = vector.broadcast %cst_5 : f32 to vector<1x512xf32>
    %9 = arith.subf %8, %7 : vector<1x512xf32>
    %10 = math.exp %9 : vector<1x512xf32>
    %11 = math.log1p %10 : vector<1x512xf32>
    %12 = arith.addf %6, %11 : vector<1x512xf32>
    %13 = tpu.iota {dimensions = array<i32: 0>} : vector<1x512xi32>
    %c1_i32 = arith.constant 1 : i32
    %14 = arith.muli %arg0, %c1_i32 : i32
    %c1_i32_6 = arith.constant 1 : i32
    %15 = arith.subi %c1_i32_6, %14 : i32
    %16 = vector.broadcast %15 : i32 to vector<1x512xi32>
    %17 = arith.cmpi slt, %13, %16 : vector<1x512xi32>
    %cst_7 = arith.constant 0.000000e+00 : f32
    %18 = vector.broadcast %cst_7 : f32 to vector<1x512xf32>
    %19 = arith.cmpf one, %2, %18 : vector<1x512xf32>
    %20 = arith.andi %17, %19 : vector<1x512xi1>
    %cst_8 = arith.constant 0.000000e+00 : f32
    %21 = vector.broadcast %cst_8 : f32 to vector<1x512xf32>
    %22 = arith.select %20, %12, %21 : vector<1x512xi1>, vector<1x512xf32>
    %cst_9 = arith.constant dense<0.000000e+00> : vector<512xf32>
    %23 = vector.multi_reduction <add>, %22, %cst_9 [0] : vector<1x512xf32> to vector<512xf32>
    %24 = vector.shape_cast %23 : vector<512xf32> to vector<1x512xf32>
    %c0_10 = arith.constant 0 : index
    %c0_11 = arith.constant 0 : index
    %25 = vector.load %arg4[%c0_10, %c0_11] : memref<1x512xf32, #tpu.memory_space<vmem>>, vector<1x512xf32>
    tpu.vector_store %arg4[%c0_10, %c0_11], %24 {strides = array<i32>} : memref<1x512xf32, #tpu.memory_space<vmem>>, vector<1x512xf32>,
    %26 = arith.extui %20 : vector<1x512xi1> to vector<1x512xi32>
    %27 = arith.sitofp %26 : vector<1x512xi32> to vector<1x512xf32>
    %cst_12 = arith.constant dense<0.000000e+00> : vector<512xf32>
    %28 = vector.multi_reduction <add>, %27, %cst_12 [0] : vector<1x512xf32> to vector<512xf32>
    %29 = vector.shape_cast %28 : vector<512xf32> to vector<1x512xf32>
    %c0_13 = arith.constant 0 : index
    %c0_14 = arith.constant 0 : index
    %30 = vector.load %arg5[%c0_13, %c0_14] : memref<1x512xf32, #tpu.memory_space<vmem>>, vector<1x512xf32>
    tpu.vector_store %arg5[%c0_13, %c0_14], %29 {strides = array<i32>} : memref<1x512xf32, #tpu.memory_space<vmem>>, vector<1x512xf32>,
    return
  }
  func.func @transform_0(%arg0: i32) -> (i32, i32) {
    %c0_i32 = arith.constant 0 : i32
    %c0_i32_0 = arith.constant 0 : i32
    return %arg0, %c0_i32 : i32, i32
  }
  func.func @transform_1(%arg0: i32) -> (i32, i32) {
    %c0_i32 = arith.constant 0 : i32
    %c0_i32_0 = arith.constant 0 : i32
    return %arg0, %c0_i32 : i32, i32
  }
  func.func @transform_2(%arg0: i32) -> (i32, i32) {
    %c0_i32 = arith.constant 0 : i32
    %c0_i32_0 = arith.constant 0 : i32
    return %arg0, %c0_i32 : i32, i32
  }
  func.func @transform_3(%arg0: i32) -> (i32, i32) {
    %c0_i32 = arith.constant 0 : i32
    %c0_i32_0 = arith.constant 0 : i32
    return %arg0, %c0_i32 : i32, i32
  }
  func.func @transform_4(%arg0: i32) -> (i32, i32) {
    %c0_i32 = arith.constant 0 : i32
    %c0_i32_0 = arith.constant 0 : i32
    return %arg0, %c0_i32 : i32, i32
  }
}

</mosaic_0001>

<bundles_post_ra>
// kernel: masked_bce_loss.1
= control target key start
LH: loop header
LB: loop body
LE: loop exit
PB: predicated region body
PF: predicated region fallthrough
CT: control target
= control target key end

     0   :  { %v36_v0 = vlaneseq  ;;  %v133_v6 = vmov 0   ;;  %vm79_vm9 = vcmask 1040384   ;;  %v134_v16 = vmov 0.0   ;;  %s221_s0 = inlined_call_operand.vmem [shape: f32[1,512], index: 0, kind: input, shape index: {}]   ;;  %s222_s2 = inlined_call_operand.vmem [shape: f32[1,512], index: 2, kind: input, shape index: {}]   ;;  %s223_s1 = inlined_call_operand.vmem [shape: f32[1,512], index: 1, kind: input, shape index: {}]   ;;  %s224_s4 = inlined_call_operand.vmem [shape: f32[1,512], index: 4, kind: output, shape index: {1}]   ;;  %s225_s3 = inlined_call_operand.vmem [shape: f32[1,512], index: 3, kind: output, shape index: {0}]  }
   0x1   :  { %v16_v1 = vld [vmem:[%s221_s0] sm:$0xf]  ;;  %vm81_vm11 = vcmask 1042434   ;;  %vm83_vm12 = vcmask 1041408  }
   0x2   :  { %v18_v2 = vld [vmem:[%s222_s2] sm:$0xf]  ;;  %v22_v3 = vand.u32 2147483647, %v16_v1  ;;  %v37_v4 = vshrl.u32 %v36_v0, 7  ;;  %vm191_vm13 = vcmp.lt.s32.totalorder %v36_v0, 512 }
   0x3   :  { %vm41_vm0 = vcmp.ne.f32.partialorder %v18_v2, 0.0  ;;  %v17_v31 = vld [vmem:[%s223_s1] sm:$0xf]  ;;  %v19_v34 = vmax.f32 %v16_v1, 0.0 }
   0x4   :  { %v23_v5 = vsub.f32 0.0, %v22_v3  ;;  %v42_v7 = vsel %vm41_vm0, 1, %v133_v6  ;;  %vm40_vm1 = vcmp.lt.s32.totalorder %v37_v4, 1  ;;  %v20_v35 = vmul.f32 %v17_v31, %v16_v1 }
   0x5   :  { %v43_v8 = vperm.slane %v42_v7, 0  ;;  %v44_v9 = vperm.slane %v42_v7, 1  ;;  %v45_v10 = vperm.slane %v42_v7, 2  ;;  %v46_v11 = vperm.slane %v42_v7, 3 }
   0x6   :  { %v24_v12 = vmul.f32 1.442695, %v23_v5  ;;  %v21_v39 = vsub.f32 %v19_v34, %v20_v35 }
   0x7   :  { %vm47_vm2 = vcmp.ne.s32.totalorder %v43_v8, 0  ;;  %vm48_vm3 = vcmp.ne.s32.totalorder %v44_v9, 0  ;;  %vm49_vm4 = vcmp.ne.s32.totalorder %v45_v10, 0  ;;  %vm50_vm5 = vcmp.ne.s32.totalorder %v46_v11, 0 }
   0x8   :  { %129 = vpow2.f32 %v24_v12  ;;  %vm166_vm6 = vmand %vm40_vm1, %vm47_vm2 }
   0x9   :  { %vm170_vm7 = vmand %vm40_vm1, %vm48_vm3  ;;  %v123_v17 = vsel %vm166_vm6, 1.0, %v134_v16 }
   0xa   :  { %vm174_vm8 = vmand %vm40_vm1, %vm49_vm4  ;;  %v124_v18 = vsel %vm170_vm7, 1.0, %v134_v16 }
   0xb   :  { %vm182_vm10 = vmand %vm40_vm1, %vm50_vm5  ;;  %v125_v20 = vsel %vm174_vm8, 1.0, %v134_v16  ;;  %v107_v21 = vrot.slane %v124_v18, 7 }
   0xc   :  { %v126_v22 = vsel %vm182_vm10, 1.0, %v134_v16  ;;  %v108_v23 = vrot.slane %v125_v20, 6 }
   0xd   :  { %v109_v24 = vrot.slane %v126_v22, 5  ;;  %v110_v25 = vsel %vm79_vm9, %v123_v17, %v107_v21 }
   0xe   :  { %v130_v26 = vpop.eup %129 }
   0xf   :  { %v26_v28 = vadd.f32 1.0, %v130_v26  ;;  %v29_v29 = vmul.f32 -0.5, %v130_v26  ;;  %v111_v30 = vsel %vm81_vm11, %v108_v23, %v109_v24  ;;  %v32_v36 = vand.u32 2147483647, %v130_v26 }
  0x10   :  { %v112_v32 = vsel %vm83_vm12, %v110_v25, %v111_v30 }
  0x11   :  { %131 = vlog2.f32 %v26_v28  ;;  %114 = vst.msk [vmem:[%s224_s4] sm:$0xf] %vm191_vm13, %v112_v32  ;;  %v30_v33 = vadd.f32 1.0, %v29_v29  ;;  %vm33_vm14 = vcmp.lt.f32.partialorder %v32_v36, 0.0004427343 }
  0x13   :  { %v31_v37 = vmul.f32 %v130_v26, %v30_v33 }
  0x17   :  { %v132_v38 = vpop.eup %131 }
  0x18   :  { %v28_v40 = vmul.f32 0.6931472, %v132_v38 }
  0x1a   :  { %v34_v41 = vsel %vm33_vm14, %v31_v37, %v28_v40 }
  0x1b   :  { %v35_v42 = vadd.f32 %v34_v41, %v21_v39 }
  0x1d   :  { %v56_v43 = vperm.slane %v35_v42, 0  ;;  %v57_v44 = vperm.slane %v35_v42, 1  ;;  %v58_v45 = vperm.slane %v35_v42, 2  ;;  %v59_v46 = vperm.slane %v35_v42, 3 }
  0x1f   :  { %v64_v47 = vsel %vm166_vm6, %v56_v43, 0.0  ;;  %v65_v48 = vsel %vm170_vm7, %v57_v44, 0.0  ;;  %v66_v49 = vsel %vm174_vm8, %v58_v45, 0.0  ;;  %v67_v50 = vsel %vm182_vm10, %v59_v46, 0.0 }
  0x20   :  { %v76_v51 = vrot.slane %v65_v48, 7  ;;  %v77_v52 = vrot.slane %v66_v49, 6  ;;  %v78_v53 = vrot.slane %v67_v50, 5 }
  0x22   :  { %v80_v54 = vsel %vm79_vm9, %v64_v47, %v76_v51  ;;  %v82_v55 = vsel %vm81_vm11, %v77_v52, %v78_v53 }
  0x23   :  { %v84_v56 = vsel %vm83_vm12, %v80_v54, %v82_v55 }
  0x24   :  { %90 = vst.msk [vmem:[%s225_s3] sm:$0xf] %vm191_vm13, %v84_v56 }

</bundles_post_ra>
